<compile_context>
chip_gen: v7x
topology: tpu7x:2x2x1
jax: 0.10.0
libtpu: 0.0.40
codegen_flags: <defaults>
</compile_context>

<pallas_src>
import jax
import jax.numpy as jnp
from jax.experimental import pallas as pl
from jax.experimental.pallas import tpu as pltpu


def _cdiv(a, b):
    return (a + b - 1) // b


def _round_up(x, m):
    return _cdiv(x, m) * m


def visual_attention_kernel(text_proj_ref, vision_ref, w1v_ref, w2_ref, b2_ref,
                            out_ref):
    # Per grid step (one tile of Bt batch rows):
    #   text_proj_ref : (Bt, Hm)   f32  VMEM  (text @ W1_text + b1, precomputed)
    #   vision_ref    : (Bt, P, C) bf16 VMEM  (p = i*H + j, C on lanes)
    #   w1v_ref       : (C, Hm)    bf16 VMEM  (pixel half of attention_hidden, resident)
    #   w2_ref        : (1, Hm)    f32  VMEM  (attention_last weight)
    #   b2_ref        : (1, 1)     f32  SMEM  (attention_last bias, scalar)
    #   out_ref       : (Bt, C)    f32  VMEM  (attended vision features, lane-dense)
    bt, p, c = vision_ref.shape
    hm = w1v_ref.shape[1]

    vis = vision_ref[...]                                         # (Bt, P, C) bf16

    # Hidden layer as one dense MXU matmul over the whole batch tile.
    hid = jnp.dot(vis.reshape(bt * p, c), w1v_ref[...],
                  preferred_element_type=jnp.float32)             # (Bt*P, Hm) f32
    hid = hid.reshape(bt, p, hm) + text_proj_ref[...][:, None, :]
    hid = jnp.maximum(hid, 0.0)                                   # ReLU, f32

    # attention_last (Hm -> 1): VPU multiply + lane reduction over Hm.
    logits = jnp.sum(hid * w2_ref[...], axis=-1) + b2_ref[0, 0]   # (Bt, P), P on lanes

    # Lane-major softmax over the pixel axis.
    m = jnp.max(logits, axis=-1, keepdims=True)                   # (Bt, 1)
    e = jnp.exp(logits - m)                                       # (Bt, P)
    denom = jnp.sum(e, axis=-1, keepdims=True)                    # (Bt, 1)
    attn = e * pl.reciprocal(denom, approx=False)                 # (Bt, P) f32

    # Attention-weighted pixel sum: (1,P)@(P,C) per row -> lane-dense (Bt, C).
    att = jnp.einsum('bqp,bpc->bqc', attn[:, None, :].astype(vis.dtype), vis,
                     preferred_element_type=jnp.float32)          # (Bt, 1, C) f32
    out_ref[...] = att[:, 0, :]


def _choose_batch_tile(B, P, C):
    """Pick a sublane-aligned batch tile Bt."""
    # Flattened MXU M dim is Bt*P; target >= 512 rows (fills v5e's 4x128 MXUs
    # and the v6e/v7x 256-row MXU).
    bt = _round_up(max(1, _cdiv(512, P)), 8)
    # Cap the bf16 vision block near 4 MiB so the double-buffered pipeline +
    # f32 hidden scratch stays well inside v7x's 64 MiB VMEM.
    cap = max(8, ((4 << 20) // max(1, P * C * 2)) // 8 * 8)
    bt = min(bt, cap)
    # Prefer >= 2 grid steps when the batch allows (v7x has 2 TensorCores).
    if B > bt:
        bt = min(bt, _round_up(_cdiv(B, 2), 8))
    # Never tile beyond the (padded) batch itself.
    bt = min(bt, _round_up(B, 8))
    return bt


def visual_attention(text, vision_nchw, params, *, batch_tile=None):
    """text: (B, T) f32, vision_nchw: (B, C, W, H) f32 -> (B, C + T) f32."""
    w1t, w1v, b1, w2, b2 = params
    B, C, W, Hh = vision_nchw.shape
    T = text.shape[1]
    Hm = w1t.shape[1]
    P = W * Hh

    bt = batch_tile if batch_tile is not None else _choose_batch_tile(B, P, C)
    B_pad = _round_up(B, bt)

    # Hoisted text projection (text half of attention_hidden + bias), f32, tiny.
    text_proj = text @ w1t + b1                                   # (B, Hm)

    # One-time layout pass: (B, C, W, H) -> (B, P, C) with p = i*H + j (same
    # flattening as torch .view(-1, C, H*W)).  bf16 halves HBM bytes of the
    # only large tensor and feeds the MXU natively.
    vision_bpc = jnp.transpose(vision_nchw.reshape(B, C, P), (0, 2, 1))
    vision_bpc = vision_bpc.astype(jnp.bfloat16)
    w1v_bf16 = w1v.astype(jnp.bfloat16)

    if B_pad != B:
        pad = B_pad - B
        text_proj = jnp.pad(text_proj, ((0, pad), (0, 0)))
        vision_bpc = jnp.pad(vision_bpc, ((0, pad), (0, 0), (0, 0)))

    vis_att = pl.pallas_call(
        visual_attention_kernel,
        out_shape=jax.ShapeDtypeStruct((B_pad, C), jnp.float32),
        grid_spec=pltpu.PrefetchScalarGridSpec(
            num_scalar_prefetch=0,
            grid=(B_pad // bt,),
            in_specs=[
                pl.BlockSpec((bt, Hm), lambda b: (b, 0)),          # text projection rows
                pl.BlockSpec((bt, P, C), lambda b: (b, 0, 0)),     # vision rows (bf16)
                pl.BlockSpec((C, Hm), lambda b: (0, 0)),           # resident weight (bf16)
                pl.BlockSpec((1, Hm), lambda b: (0, 0)),           # attention_last weight
                pl.BlockSpec(memory_space=pltpu.MemorySpace.SMEM),  # attention_last bias
            ],
            out_specs=pl.BlockSpec((bt, C), lambda b: (b, 0)),
        ),
        compiler_params=pltpu.CompilerParams(
            dimension_semantics=("parallel",),
            # Sized for v7x's 64 MiB VMEM; v5e/v6e (128 MiB) have more headroom.
            vmem_limit_bytes=48 * 1024 * 1024,
        ),
    )(text_proj, vision_bpc, w1v_bf16, w2, b2)

    # concatenate_text_vision: attended vision features first, then text.
    return jnp.concatenate([vis_att[:B], text], axis=1)


def visual_attention_reference(text, vision_nchw, params):
    """Pure-JAX f32 reference mirroring the PyTorch forward (vectorized)."""
    w1t, w1v, b1, w2, b2 = params
    B, C, W, Hh = vision_nchw.shape
    P = W * Hh
    vis = vision_nchw.reshape(B, C, P)                                # (B, C, P)
    pre = (jnp.einsum('bcp,ch->bph', vis, w1v)
           + (text @ w1t)[:, None, :] + b1[None, :, :])               # (B, P, Hm)
    hid = jnp.maximum(pre, 0.0)
    logits = jnp.einsum('bph,h->bp', hid, w2[0]) + b2[0, 0]           # (B, P)
    attn = jax.nn.softmax(logits, axis=1)
    vis_att = jnp.einsum('bcp,bp->bc', vis, attn)                     # (B, C)
    return jnp.concatenate([vis_att, text], axis=1)


def make_params(key, text_size, vision_n_featmap, hidden_mlp_size):
    """Deterministic synthetic weights matching the nn.Linear shapes.

    attention_hidden: Linear(T + C, Hm) -> stored transposed, split by input:
        w1t (T, Hm), w1v (C, Hm), b1 (1, Hm)
    attention_last:   Linear(Hm, 1)     -> w2 (1, Hm), b2 (1, 1)
    """
    k1, k2, k3, k4, k5 = jax.random.split(key, 5)
    T, C, Hm = text_size, vision_n_featmap, hidden_mlp_size
    scale1 = 1.0 / jnp.sqrt(T + C)
    scale2 = 1.0 / jnp.sqrt(Hm)
    w1t = jax.random.normal(k1, (T, Hm), jnp.float32) * scale1
    w1v = jax.random.normal(k2, (C, Hm), jnp.float32) * scale1
    b1 = jax.random.normal(k3, (1, Hm), jnp.float32) * scale1
    w2 = jax.random.normal(k4, (1, Hm), jnp.float32) * scale2
    b2 = jax.random.normal(k5, (1, 1), jnp.float32) * scale2
    return (w1t, w1v, b1, w2, b2)


if __name__ == "__main__":
    # Small shapes consistent with the module's forward.
    B, C, W, Hh = 2, 4, 4, 4      # batch, n_feature_map, width, height
    T = 8                         # text (lstm hidden) size
    H_MLP = 32                    # hidden_mlp_size > 0 path

    key = jax.random.PRNGKey(0)
    k_text, k_vis, k_param = jax.random.split(key, 3)
    text = jax.random.normal(k_text, (B, T), jnp.float32)
    vision = jax.random.normal(k_vis, (B, C, W, Hh), jnp.float32)
    params = make_params(k_param, T, C, H_MLP)

    out = visual_attention(text, vision, params)
    out = jax.block_until_ready(out)

    ref = visual_attention_reference(text, vision, params)
    assert out.shape == (B, C + T), out.shape
    # bf16 MXU inputs (vision / w1v / softmax weights) => ~1e-2-level error vs
    # the f32 reference.
    assert jnp.allclose(out, ref, atol=2e-2, rtol=2e-2), (out, ref)
    print("KERNEL_OK")
</pallas_src>

<mosaic_0001>
module attributes {stable_mosaic.version = 11 : i64} {
  func.func @visual_attention_kernel(%arg0: i32, %arg1: memref<8x32xf32, #tpu.memory_space<vmem>>, %arg2: memref<8x16x4xbf16, #tpu.memory_space<vmem>>, %arg3: memref<4x32xbf16, #tpu.memory_space<vmem>>, %arg4: memref<1x32xf32, #tpu.memory_space<vmem>>, %arg5: memref<1x1xf32, #tpu.memory_space<smem>>, %arg6: memref<8x4xf32, #tpu.memory_space<vmem>>) attributes {dimension_semantics = [#tpu.dimension_semantics<parallel>], iteration_bounds = array<i64: 1>, scalar_prefetch = 0 : i64, scratch_operands = 0 : i64, tpu.core_type = #tpu.core_type<tc>, window_params = [{transform_indices = @transform_0, window_bounds = array<i64: 8, 32>}, {transform_indices = @transform_1, window_bounds = array<i64: 8, 16, 4>}, {pipeline_mode = #tpu.pipeline_mode<synchronous>, transform_indices = @transform_2, window_bounds = array<i64: 4, 32>}, {pipeline_mode = #tpu.pipeline_mode<synchronous>, transform_indices = @transform_3, window_bounds = array<i64: 1, 32>}, {transform_indices = @transform_4, window_bounds = array<i64: 1, 1>}, {transform_indices = @transform_5, window_bounds = array<i64: 8, 4>}]} {
    %c0 = arith.constant 0 : index
    %c0_0 = arith.constant 0 : index
    %c0_1 = arith.constant 0 : index
    %0 = vector.load %arg2[%c0, %c0_0, %c0_1] : memref<8x16x4xbf16, #tpu.memory_space<vmem>>, vector<8x16x4xbf16>
    %1 = vector.shape_cast %0 : vector<8x16x4xbf16> to vector<128x4xbf16>
    %c0_2 = arith.constant 0 : index
    %c0_3 = arith.constant 0 : index
    %2 = vector.load %arg3[%c0_2, %c0_3] : memref<4x32xbf16, #tpu.memory_space<vmem>>, vector<4x32xbf16>
    %cst = arith.constant dense<0.000000e+00> : vector<128x32xf32>
    %3 = tpu.matmul %1, %2, %cst {dimension_numbers = #tpu.dot_dimension_numbers<[1], [0], [0], [1], [0, 0, 1, 1], [], []>} : vector<128x4xbf16>, vector<4x32xbf16>, vector<128x32xf32> -> vector<128x32xf32>
    %4 = vector.shape_cast %3 : vector<128x32xf32> to vector<8x16x32xf32>
    %c0_4 = arith.constant 0 : index
    %c0_5 = arith.constant 0 : index
    %5 = vector.load %arg1[%c0_4, %c0_5] : memref<8x32xf32, #tpu.memory_space<vmem>>, vector<8x32xf32>
    %6 = vector.shape_cast %5 : vector<8x32xf32> to vector<8x1x32xf32>
    %7 = vector.broadcast %6 : vector<8x1x32xf32> to vector<8x16x32xf32>
    %8 = arith.addf %4, %7 : vector<8x16x32xf32>
    %cst_6 = arith.constant 0.000000e+00 : f32
    %9 = vector.broadcast %cst_6 : f32 to vector<8x16x32xf32>
    %10 = arith.maximumf %8, %9 : vector<8x16x32xf32>
    %c0_7 = arith.constant 0 : index
    %c0_8 = arith.constant 0 : index
    %11 = vector.load %arg4[%c0_7, %c0_8] : memref<1x32xf32, #tpu.memory_space<vmem>>, vector<1x32xf32>
    %12 = vector.shape_cast %11 : vector<1x32xf32> to vector<1x1x32xf32>
    %13 = vector.broadcast %12 : vector<1x1x32xf32> to vector<8x16x32xf32>
    %14 = arith.mulf %10, %13 : vector<8x16x32xf32>
    %cst_9 = arith.constant dense<0.000000e+00> : vector<8x16xf32>
    %15 = vector.multi_reduction <add>, %14, %cst_9 [2] : vector<8x16x32xf32> to vector<8x16xf32>
    %c0_10 = arith.constant 0 : index
    %c0_11 = arith.constant 0 : index
    %16 = memref.load %arg5[%c0_10, %c0_11] : memref<1x1xf32, #tpu.memory_space<smem>>
    %17 = vector.broadcast %16 : f32 to vector<8x16xf32>
    %18 = arith.addf %15, %17 : vector<8x16xf32>
    %cst_12 = arith.constant dense<0xFF800000> : vector<8xf32>
    %19 = vector.multi_reduction <maximumf>, %18, %cst_12 [1] : vector<8x16xf32> to vector<8xf32>
    %20 = vector.shape_cast %19 : vector<8xf32> to vector<8x1xf32>
    %21 = vector.broadcast %20 : vector<8x1xf32> to vector<8x16xf32>
    %22 = arith.subf %18, %21 : vector<8x16xf32>
    %23 = math.exp %22 : vector<8x16xf32>
    %cst_13 = arith.constant dense<0.000000e+00> : vector<8xf32>
    %24 = vector.multi_reduction <add>, %23, %cst_13 [1] : vector<8x16xf32> to vector<8xf32>
    %25 = vector.shape_cast %24 : vector<8xf32> to vector<8x1xf32>
    %26 = tpu.reciprocal %25 : vector<8x1xf32> -> vector<8x1xf32>
    %27 = vector.broadcast %26 : vector<8x1xf32> to vector<8x16xf32>
    %28 = arith.mulf %23, %27 : vector<8x16xf32>
    %29 = vector.shape_cast %28 : vector<8x16xf32> to vector<8x1x16xf32>
    %30 = arith.truncf %29 : vector<8x1x16xf32> to vector<8x1x16xbf16>
    "tpu.trace_start"() <{level = 10 : i32, message = "bqp,bpc->bqc"}> : () -> ()
    %cst_14 = arith.constant dense<0.000000e+00> : vector<8x1x4xf32>
    %31 = tpu.matmul %30, %0, %cst_14 {dimension_numbers = #tpu.dot_dimension_numbers<[2], [1], [1], [2], [0, 0, 0, 1, 1, 2], [0], [0]>} : vector<8x1x16xbf16>, vector<8x16x4xbf16>, vector<8x1x4xf32> -> vector<8x1x4xf32>
    "tpu.trace_stop"() : () -> ()
    %32 = vector.shape_cast %31 : vector<8x1x4xf32> to vector<8x4xf32>
    %c0_15 = arith.constant 0 : index
    %c0_16 = arith.constant 0 : index
    %33 = vector.load %arg6[%c0_15, %c0_16] : memref<8x4xf32, #tpu.memory_space<vmem>>, vector<8x4xf32>
    tpu.vector_store %arg6[%c0_15, %c0_16], %32 {strides = array<i32>} : memref<8x4xf32, #tpu.memory_space<vmem>>, vector<8x4xf32>,
    return
  }
  func.func @transform_0(%arg0: i32) -> (i32, i32) {
    %c0_i32 = arith.constant 0 : i32
    %c0_i32_0 = arith.constant 0 : i32
    return %arg0, %c0_i32 : i32, i32
  }
  func.func @transform_1(%arg0: i32) -> (i32, i32, i32) {
    %c0_i32 = arith.constant 0 : i32
    %c0_i32_0 = arith.constant 0 : i32
    %c0_i32_1 = arith.constant 0 : i32
    return %arg0, %c0_i32, %c0_i32_0 : i32, i32, i32
  }
  func.func @transform_2(%arg0: i32) -> (i32, i32) {
    %c0_i32 = arith.constant 0 : i32
    %c0_i32_0 = arith.constant 0 : i32
    %c0_i32_1 = arith.constant 0 : i32
    return %c0_i32, %c0_i32_0 : i32, i32
  }
  func.func @transform_3(%arg0: i32) -> (i32, i32) {
    %c0_i32 = arith.constant 0 : i32
    %c0_i32_0 = arith.constant 0 : i32
    %c0_i32_1 = arith.constant 0 : i32
    return %c0_i32, %c0_i32_0 : i32, i32
  }
  func.func @transform_4(%arg0: i32) -> (i32, i32) {
    %c0_i32 = arith.constant 0 : i32
    %c0_i32_0 = arith.constant 0 : i32
    %c0_i32_1 = arith.constant 0 : i32
    return %c0_i32, %c0_i32_0 : i32, i32
  }
  func.func @transform_5(%arg0: i32) -> (i32, i32) {
    %c0_i32 = arith.constant 0 : i32
    %c0_i32_0 = arith.constant 0 : i32
    return %arg0, %c0_i32 : i32, i32
  }
}

</mosaic_0001>

<bundles_post_ra>
// kernel: tpu_custom_call.1
= control target key start
LH: loop header
LB: loop body
LE: loop exit
PB: predicated region body
PF: predicated region fallthrough
CT: control target
= control target key end

     0   :  { %vm104_vm0 = vcmask 1041408   ;;  %vm79_vm1 = vcmask 31744   ;;  %v1529_v10 = vmov 1966171168   ;;  %v211_v12 = vlaneseq  ;;  %s1999_s2 = inlined_call_operand.vmem [shape: bf16[4,32], index: 2, kind: input, shape index: {}]   ;;  %s2000_s1 = inlined_call_operand.vmem [shape: bf16[8,16,4], index: 1, kind: input, shape index: {}]   ;;  %s2001_s0 = inlined_call_operand.vmem [shape: f32[8,32], index: 0, kind: input, shape index: {}]   ;;  %s2002_s3 = inlined_call_operand.vmem [shape: f32[1,32], index: 3, kind: input, shape index: {}]   ;;  %s2003_s4 = inlined_call_operand.<no memory space> [shape: f32[1,1], index: 4, kind: input, shape index: {}]   ;;  %s2004_s5 = inlined_call_operand.vmem [shape: f32[8,4], index: 5, kind: output, shape index: {}]  }
   0x1   :  { %v38_v0 = vld [vmem:[%s1999_s2] sm:$0x3]  ;;  %v1574_v3 = vld [vmem:[%s2000_s1 + $0x8] sm:$0xff]   ;;  %v1581_v4 = vld [vmem:[%s2000_s1 + $0x10] sm:$0xff]   ;;  %v209_v11 = vunpack.c.l.s4 %v1529_v10  ;;  %vm351_vm2 = vcmask 261120   ;;  %vm445_vm3 = vcmask 130112  }
   0x2   :  { %1479 = vmatprep.subr.msk.bf16.mxu0 %vm104_vm0, %v38_v0  ;;  %v106_v1 = vsel %vm104_vm0, %v38_v0, 0  ;;  %v1569_v2 = vld [vmem:[%s2000_s1] sm:$0xff]   ;;  %v1590_v5 = vld [vmem:[%s2000_s1 + $0x18] sm:$0xff]   ;;  %v1604_v7 = vld [vmem:[%s2000_s1 + $0x28] sm:$0xff]   ;;  %v1623_v14 = vshrl.u32 %v211_v12, 7  ;;  %vm510_vm4 = vcmask 1041409  }
   0x3   :  { %1414 = vmatpush3.bf16.msra.mxu0 %v106_v1  ;;  %1415 = vmatprep.mubr.msk.bf16.mxu0 %vm79_vm1, %v1569_v2  ;;  %v1595_v6 = vld [vmem:[%s2000_s1 + $0x20] sm:$0xff]   ;;  %v1609_v8 = vld [vmem:[%s2000_s1 + $0x30] sm:$0xff]   ;;  %v1618_v9 = vld [vmem:[%s2000_s1 + $0x38] sm:$0xff]   ;;  %v210_v13 = vunpack.c.0.s8 %v209_v11  ;;  %vm512_vm5 = vcmask 1042434   ;;  %vm514_vm6 = vcmask 1043459   ;;  %vm516_vm7 = vcmask 1044484  }
   0x4   :  { %v205_v16 = vld [vmem:[%s2001_s0] sm:$0xff]  ;;  %v1630_v20 = vsub.s32 0, %v1623_v14  ;;  %vm518_vm8 = vcmask 1045509   ;;  %vm520_vm9 = vcmask 1046534   ;;  %vm522_vm10 = vcmask 1047559  }
   0x5   :  { %v213_v15 = vsub.s32 %v210_v13, %v1623_v14  ;;  %v207_v23 = vcombine.high %v205_v16, %v205_v16  ;;  %v1637_v32 = vld [vmem:[%s2002_s3] ss:$0 sm:$0xff]  ;;  %vm525_vm11 = vcmask 130048   ;;  %vm1532_vm12 = vmmov 0  }
   0x6   :  { %1416 = vmatmul.mubr.msk.bf16.vlgmr.msra.gmra.mrb[0].mxu0 %vm79_vm1, %v1574_v3 }
   0x7   :  { %1419 = vmatprep.mubr.msk.bf16.mxu0 %vm79_vm1, %v1581_v4  ;;  %v214_v17 = vrot.slane %v205_v16, %v213_v15  ;;  %v221_v29 = vrot.slane %v207_v23, %v213_v15 }
   0x9   :  { %v222_v18 = vcombine.high %v214_v17, %v214_v17  ;;  %v230_v21 = vrot.slane %v214_v17, %v213_v15  ;;  %v223_v42 = vcombine.high %v221_v29, %v221_v29  ;;  %v237_v56 = vrot.slane %v221_v29, %v213_v15 }
   0xb   :  { %v244_v19 = vrot.slane %v222_v18, %v213_v15  ;;  %v259_v24 = vrot.slane %v230_v21, %v1630_v20  ;;  %v252_v33 = vcombine.high %v230_v21, %v230_v21  ;;  %v251_v53 = vrot.slane %v223_v42, %v213_v15 }
   0xc   :  { %v275_v13 = vrot.slane %v237_v56, %v1630_v20 }
   0xd   :  { %v263_v22 = vrot.slane %v244_v19, %v1630_v20  ;;  %v254_v28 = vcombine.high %v244_v19, %v244_v19  ;;  %v267_v44 = vrot.slane %v252_v33, %v1630_v20  ;;  %v279_v1 = vrot.slane %v251_v53, %v1630_v20 }
   0xe   :  { %1420 = vmatmul.mubr.msk.bf16.gmra.mrb[4].mxu0 %vm79_vm1, %v1590_v5 }
   0xf   :  { %1423 = vmatprep.mubr.msk.bf16.mxu0 %vm79_vm1, %v1595_v6  ;;  %v271_v40 = vrot.slane %v254_v28, %v1630_v20 }
  0x16   :  { %1424 = vmatmul.mubr.msk.bf16.gmra.mrb[8].mxu0 %vm79_vm1, %v1604_v7 }
  0x17   :  { %1427 = vmatprep.mubr.msk.bf16.mxu0 %vm79_vm1, %v1609_v8 }
  0x1e   :  { %1428 = vmatmul.mubr.msk.bf16.gmra.mrb[12].mxu0 %vm79_vm1, %v1618_v9 }
  0xd9   :  { %v1417_v25 = vpop.f32.mrb[0].mxu0 }
  0xda   :  { %v298_v26 = vadd.f32 %v1417_v25, %v263_v22  ;;  %v142_v27 = vpop.f32.mrb[1].mxu0 }
  0xdb   :  { %v296_v30 = vadd.f32 %v259_v24, %v142_v27  ;;  %v1418_v31 = vpop.f32.mrb[2].mxu0  ;;  %v253_v27 = vcombine.high %v237_v56, %v237_v56 }
  0xdc   :  { %v314_v34 = vmax.f32 %v298_v26, 0.0  ;;  %v299_v35 = vadd.f32 %v1418_v31, %v263_v22  ;;  %v145_v36 = vpop.f32.mrb[3].mxu0 }
  0xdd   :  { %v312_v37 = vmax.f32 %v296_v30, 0.0  ;;  %v297_v38 = vadd.f32 %v259_v24, %v145_v36  ;;  %v255_v24 = vcombine.high %v251_v53, %v251_v53 }
  0xde   :  { %v315_v39 = vmax.f32 %v299_v35, 0.0  ;;  %v337_v41 = vmul.f32 %v1637_v32, %v314_v34 }
  0xdf   :  { %v313_v43 = vmax.f32 %v297_v38, 0.0  ;;  %v335_v45 = vmul.f32 %v1637_v32, %v312_v37  ;;  %v287_v37 = vrot.slane %v255_v24, %v1630_v20 }
  0xe0   :  { %v358_v46 = vsel %vm351_vm2, %v337_v41, 0.0  ;;  %v338_v47 = vmul.f32 %v1637_v32, %v315_v39 }
  0xe1   :  { %v1421_v48 = vpop.f32.mrb[4].mxu0  ;;  %359 = vadd.xlane.f32.xlu1 %v358_v46  ;;  %v352_v49 = vsel %vm351_vm2, %v335_v45, 0.0  ;;  %v336_v50 = vmul.f32 %v1637_v32, %v313_v43 }
  0xe2   :  { %v302_v51 = vadd.f32 %v1421_v48, %v271_v40  ;;  %v158_v52 = vpop.f32.mrb[5].mxu0  ;;  %353 = vadd.xlane.f32.xlu0 %v352_v49  ;;  %v361_v60 = vsel %vm351_vm2, %v338_v47, 0.0 }
  0xe3   :  { %v300_v54 = vadd.f32 %v267_v44, %v158_v52  ;;  %v1422_v55 = vpop.f32.mrb[6].mxu0  ;;  %v355_v63 = vsel %vm351_vm2, %v336_v50, 0.0 }
  0xe4   :  { %v318_v57 = vmax.f32 %v302_v51, 0.0  ;;  %v303_v58 = vadd.f32 %v1422_v55, %v271_v40  ;;  %v161_v59 = vpop.f32.mrb[7].mxu0  ;;  %v283_v40 = vrot.slane %v253_v27, %v1630_v20 }
  0xe5   :  { %v316_v61 = vmax.f32 %v300_v54, 0.0  ;;  %v301_v62 = vadd.f32 %v267_v44, %v161_v59  ;;  %362 = vadd.xlane.f32.xlu1 %v361_v60 }
  0xe6   :  { %v319_v0 = vmax.f32 %v303_v58, 0.0  ;;  %356 = vadd.xlane.f32.xlu0 %v355_v63  ;;  %v341_v10 = vmul.f32 %v1637_v32, %v318_v57 }
  0xe7   :  { %v317_v11 = vmax.f32 %v301_v62, 0.0  ;;  %v339_v18 = vmul.f32 %v1637_v32, %v316_v61 }
  0xe8   :  { %v370_v15 = vsel %vm351_vm2, %v341_v10, 0.0  ;;  %v342_v16 = vmul.f32 %v1637_v32, %v319_v0 }
  0xe9   :  { %v1425_v17 = vpop.f32.mrb[8].mxu0  ;;  %v340_v23 = vmul.f32 %v1637_v32, %v317_v11  ;;  %v364_v34 = vsel %vm351_vm2, %v339_v18, 0.0 }
  0xea   :  { %v306_v19 = vadd.f32 %v1425_v17, %v279_v1  ;;  %v174_v21 = vpop.f32.mrb[9].mxu0  ;;  %371 = vadd.xlane.f32.xlu0 %v370_v15  ;;  %v373_v22 = vsel %vm351_vm2, %v342_v16, 0.0 }
  0xeb   :  { %v304_v25 = vadd.f32 %v275_v13, %v174_v21  ;;  %v1426_v26 = vpop.f32.mrb[10].mxu0  ;;  %374 = vadd.xlane.f32.xlu1 %v373_v22  ;;  %v367_v36 = vsel %vm351_vm2, %v340_v23, 0.0 }
  0xec   :  { %v322_v28 = vmax.f32 %v306_v19, 0.0  ;;  %v307_v29 = vadd.f32 %v1426_v26, %v279_v1  ;;  %v177_v30 = vpop.f32.mrb[11].mxu0  ;;  %v435_v19 = vand.u32 127, %v211_v12 }
  0xed   :  { %v320_v31 = vmax.f32 %v304_v25, 0.0  ;;  %v305_v33 = vadd.f32 %v275_v13, %v177_v30 }
  0xee   :  { %v323_v35 = vmax.f32 %v307_v29, 0.0  ;;  %365 = vadd.xlane.f32.xlu0 %v364_v34  ;;  %v345_v38 = vmul.f32 %v1637_v32, %v322_v28  ;;  %v440_v22 = vadd.s32 4294967288, %v435_v19  ;;  %v1693_v30 = vsub.s32 %v435_v19, %v1623_v14 }
  0xef   :  { %v321_v39 = vmax.f32 %v305_v33, 0.0  ;;  %368 = vadd.xlane.f32.xlu1 %v367_v36  ;;  %v343_v44 = vmul.f32 %v1637_v32, %v320_v31 }
  0xf0   :  { %v382_v41 = vsel %vm351_vm2, %v345_v38, 0.0  ;;  %v346_v42 = vmul.f32 %v1637_v32, %v323_v35  ;;  %v1682_v25 = vsub.s32 %v440_v22, %v1623_v14 }
  0xf1   :  { %v1429_v43 = vpop.f32.mrb[12].mxu0  ;;  %v344_v48 = vmul.f32 %v1637_v32, %v321_v39  ;;  %v376_v56 = vsel %vm351_vm2, %v343_v44, 0.0 }
  0xf2   :  { %v310_v45 = vadd.f32 %v1429_v43, %v287_v37  ;;  %v190_v46 = vpop.f32.mrb[13].mxu0  ;;  %383 = vadd.xlane.f32.xlu0 %v382_v41  ;;  %v385_v47 = vsel %vm351_vm2, %v346_v42, 0.0 }
  0xf3   :  { %v308_v49 = vadd.f32 %v283_v40, %v190_v46  ;;  %v1430_v50 = vpop.f32.mrb[14].mxu0  ;;  %386 = vadd.xlane.f32.xlu1 %v385_v47  ;;  %v379_v57 = vsel %vm351_vm2, %v344_v48, 0.0 }
  0xf4   :  { %v311_v51 = vadd.f32 %v1430_v50, %v287_v37  ;;  %v193_v52 = vpop.f32.mrb[15].mxu0  ;;  %v326_v53 = vmax.f32 %v310_v45, 0.0 }
  0xf5   :  { %v324_v54 = vmax.f32 %v308_v49, 0.0  ;;  %v309_v55 = vadd.f32 %v283_v40, %v193_v52 }
  0xf6   :  { %377 = vadd.xlane.f32.xlu0 %v376_v56  ;;  %v327_v58 = vmax.f32 %v311_v51, 0.0  ;;  %v349_v63 = vmul.f32 %v1637_v32, %v326_v53 }
  0xf7   :  { %v325_v59 = vmax.f32 %v309_v55, 0.0  ;;  %380 = vadd.xlane.f32.xlu1 %v379_v57  ;;  %v347_v60 = vmul.f32 %v1637_v32, %v324_v54 }
  0xf8   :  { %v350_v1 = vmul.f32 %v1637_v32, %v327_v58  ;;  %v394_v10 = vsel %vm351_vm2, %v349_v63, 0.0 }
  0xf9   :  { %v388_v61 = vsel %vm351_vm2, %v347_v60, 0.0  ;;  %v348_v62 = vmul.f32 %v1637_v32, %v325_v59  ;;  %v401_v32 = vstv %s2003_s4 }
  0xfa   :  { %389 = vadd.xlane.f32.xlu0 %v388_v61  ;;  %v397_v11 = vsel %vm351_vm2, %v350_v1, 0.0 }
  0xfb   :  { %v391_v0 = vsel %vm351_vm2, %v348_v62, 0.0 }
  0xfc   :  { %392 = vadd.xlane.f32.xlu1 %v391_v0 }
  0xfe   :  { %395 = vadd.xlane.f32.xlu0 %v394_v10 }
 0x100   :  { %398 = vadd.xlane.f32.xlu1 %v397_v11 }
 0x16e   :  { %v360_v13 = vpop.xlane.xlu1 %359 }
 0x16f   :  { %v354_v15 = vpop.xlane.xlu0 %353  ;;  %v1695_v31 = vadd.f32 %v401_v32, %v360_v13 }
 0x170   :  { %v1697_v33 = vadd.f32 %v401_v32, %v354_v15 }
 0x171   :  { %v450_v42 = vrot.slane %v1695_v31, %v1693_v30 }
 0x172   :  { %v363_v17 = vpop.xlane.xlu1 %362  ;;  %v439_v43 = vrot.slane %v1697_v33, %v1693_v30 }
 0x173   :  { %v357_v16 = vpop.xlane.xlu0 %356  ;;  %v1684_v26 = vadd.f32 %v401_v32, %v363_v17 }
 0x174   :  { %v1686_v27 = vadd.f32 %v401_v32, %v357_v16 }
 0x175   :  { %v454_v35 = vrot.slane %v1684_v26, %v1682_v25 }
 0x176   :  { %v444_v36 = vrot.slane %v1686_v27, %v1682_v25 }
 0x177   :  { %v372_v18 = vpop.xlane.xlu0 %371  ;;  %v455_v47 = vsel %vm445_vm3, %v454_v35, %v450_v42 }
 0x178   :  { %v375_v21 = vpop.xlane.xlu1 %374  ;;  %v1703_v37 = vadd.f32 %v401_v32, %v372_v18  ;;  %v446_v48 = vsel %vm445_vm3, %v444_v36, %v439_v43 }
 0x179   :  { %v1705_v38 = vadd.f32 %v401_v32, %v375_v21  ;;  %v511_v57 = vsel %vm510_vm4, %v455_v47, %v446_v48 }
 0x17a   :  { %v468_v49 = vrot.slane %v1703_v37, %v1693_v30 }
 0x17b   :  { %v366_v23 = vpop.xlane.xlu0 %365  ;;  %v472_v50 = vrot.slane %v1705_v38, %v1682_v25 }
 0x17c   :  { %v369_v24 = vpop.xlane.xlu1 %368  ;;  %v1688_v28 = vadd.f32 %v401_v32, %v366_v23 }
 0x17d   :  { %v1690_v29 = vadd.f32 %v401_v32, %v369_v24  ;;  %v473_v62 = vsel %vm445_vm3, %v472_v50, %v468_v49  ;;  %v540_v49 = vsub.s32 2, %v1623_v14 }
 0x17e   :  { %v459_v39 = vrot.slane %v1688_v28, %v1693_v30 }
 0x17f   :  { %v384_v12 = vpop.xlane.xlu0 %383  ;;  %v463_v40 = vrot.slane %v1690_v29, %v1682_v25 }
 0x180   :  { %v387_v34 = vpop.xlane.xlu1 %386  ;;  %v1730_v55 = vadd.f32 %v401_v32, %v384_v12 }
 0x181   :  { %v464_v51 = vsel %vm445_vm3, %v463_v40, %v459_v39  ;;  %v1732_v56 = vadd.f32 %v401_v32, %v387_v34  ;;  %v1530_v39 = vmov 0   ;;  %v536_v40 = vsub.s32 1, %v1623_v14 }
 0x182   :  { %v513_v60 = vsel %vm512_vm5, %v464_v51, %v511_v57  ;;  %v486_v1 = vrot.slane %v1730_v55, %v1693_v30  ;;  %1485 = vset.pattern.permute.xlu0 %v1530_v39  ;;  %1484 = vset.pattern.permute.xlu1 %v1530_v39  ;;  %v556_v51 = vsub.s32 6, %v1623_v14 }
 0x183   :  { %v378_v41 = vpop.xlane.xlu0 %377  ;;  %v490_v10 = vrot.slane %v1732_v56, %v1682_v25  ;;  %v515_v17 = vsel %vm514_vm6, %v473_v62, %v513_v60  ;;  %v544_v62 = vsub.s32 3, %v1623_v14 }
 0x184   :  { %v1715_v44 = vadd.f32 %v401_v32, %v378_v41  ;;  %v381_v45 = vpop.xlane.xlu1 %380 }
 0x185   :  { %v1717_v46 = vadd.f32 %v401_v32, %v381_v45  ;;  %v491_v22 = vsel %vm445_vm3, %v490_v10, %v486_v1  ;;  %v552_v45 = vsub.s32 5, %v1623_v14 }
 0x186   :  { %v477_v52 = vrot.slane %v1715_v44, %v1693_v30 }
 0x187   :  { %v481_v53 = vrot.slane %v1717_v46, %v1682_v25  ;;  %v390_v54 = vpop.xlane.xlu0 %389 }
 0x188   :  { %v1735_v58 = vadd.f32 %v401_v32, %v390_v54 }
 0x189   :  { %v393_v59 = vpop.xlane.xlu1 %392  ;;  %v482_v63 = vsel %vm445_vm3, %v481_v53, %v477_v52 }
 0x18a   :  { %v1738_v61 = vadd.f32 %v401_v32, %v393_v59  ;;  %v495_v15 = vrot.slane %v1735_v58, %v1693_v30  ;;  %v517_v19 = vsel %vm516_vm7, %v482_v63, %v515_v17 }
 0x18b   :  { %v396_v0 = vpop.xlane.xlu0 %395  ;;  %v519_v12 = vsel %vm518_vm8, %v491_v22, %v517_v19 }
 0x18c   :  { %v499_v11 = vrot.slane %v1738_v61, %v1682_v25  ;;  %v1748_v13 = vadd.f32 %v401_v32, %v396_v0 }
 0x18d   :  { %v399_v16 = vpop.xlane.xlu1 %398 }
 0x18e   :  { %v1753_v18 = vadd.f32 %v401_v32, %v399_v16  ;;  %v500_v21 = vsel %vm445_vm3, %v499_v11, %v495_v15  ;;  %v504_v23 = vrot.slane %v1748_v13, %v1693_v30 }
 0x18f   :  { %v521_v34 = vsel %vm520_vm9, %v500_v21, %v519_v12 }
 0x190   :  { %v508_v24 = vrot.slane %v1753_v18, %v1682_v25 }
 0x192   :  { %v509_v32 = vsel %vm445_vm3, %v508_v24, %v504_v23 }
 0x193   :  { %v523_v35 = vsel %vm522_vm10, %v509_v32, %v521_v34 }
 0x194   :  { %v526_v36 = vsel %vm525_vm11, %v523_v35, -inf }
 0x195   :  { %527 = vmax.xlane.f32.xlu0 %v526_v36 }
 0x222   :  { %v528_v41 = vpop.xlane.xlu0 %527 }
 0x223   :  { %v533_v42 = vrot.slane %v528_v41, %v1630_v20  ;;  %v537_v43 = vrot.slane %v528_v41, %v536_v40  ;;  %v1779_v52 = vrot.slane %v528_v41, %v552_v45  ;;  %v541_v57 = vrot.slane %v528_v41, %v540_v49 }
 0x224   :  { %v545_v11 = vrot.slane %v528_v41, %v544_v62 }
 0x225   :  { %v570_v47 = vsub.f32 %v1697_v33, %v533_v42  ;;  %v571_v48 = vsub.f32 %v1686_v27, %v533_v42  ;;  %v572_v50 = vsub.f32 %v1695_v31, %v537_v43  ;;  %v573_v59 = vsub.f32 %v1684_v26, %v537_v43 }
 0x226   :  { %v560_v27 = vsub.s32 7, %v1623_v14  ;;  %v1787_v31 = vrot.slane %v528_v41, %v556_v51  ;;  %v580_v60 = vsub.f32 %v1730_v55, %v1779_v52  ;;  %v574_v63 = vsub.f32 %v1688_v28, %v541_v57 }
 0x227   :  { %v586_v53 = vmul.f32 1.442695, %v570_v47  ;;  %v588_v54 = vmul.f32 1.442695, %v571_v48  ;;  %v590_v33 = vmul.f32 1.442695, %v572_v50  ;;  %v575_v15 = vsub.f32 %v1690_v29, %v541_v57 }
 0x228   :  { %v592_v0 = vmul.f32 1.442695, %v573_v59  ;;  %v561_v26 = vrot.slane %v528_v41, %v560_v27  ;;  %v582_v1 = vsub.f32 %v1735_v58, %v1787_v31  ;;  %v606_v10 = vmul.f32 1.442695, %v580_v60 }
 0x229   :  { %1495 = vpow2.f32 %v586_v53  ;;  %v594_v55 = vmul.f32 1.442695, %v574_v63  ;;  %v548_v58 = vsub.s32 4, %v1623_v14  ;;  %v576_v21 = vsub.f32 %v1703_v37, %v545_v11 }
 0x22a   :  { %1497 = vpow2.f32 %v588_v54  ;;  %v584_v28 = vsub.f32 %v1748_v13, %v561_v26  ;;  %v610_v17 = vmul.f32 1.442695, %v582_v1  ;;  %v596_v22 = vmul.f32 1.442695, %v575_v15 }
 0x22b   :  { %1499 = vpow2.f32 %v590_v33  ;;  %v549_v13 = vrot.slane %v528_v41, %v548_v58  ;;  %v577_v24 = vsub.f32 %v1705_v38, %v545_v11  ;;  %v598_v12 = vmul.f32 1.442695, %v576_v21 }
 0x22c   :  { %1501 = vpow2.f32 %v592_v0  ;;  %v614_v23 = vmul.f32 1.442695, %v584_v28  ;;  %v581_v43 = vsub.f32 %v1732_v56, %v1779_v52  ;;  %v585_v54 = vsub.f32 %v1753_v18, %v561_v26 }
 0x22d   :  { %1503 = vpow2.f32 %v606_v10  ;;  %v578_v34 = vsub.f32 %v1715_v44, %v549_v13  ;;  %v600_v35 = vmul.f32 1.442695, %v577_v24  ;;  %v579_v39 = vsub.f32 %v1717_v46, %v549_v13 }
 0x22e   :  { %1505 = vpow2.f32 %v594_v55  ;;  %v583_v46 = vsub.f32 %v1738_v61, %v1787_v31  ;;  %v608_v50 = vmul.f32 1.442695, %v581_v43  ;;  %v616_v57 = vmul.f32 1.442695, %v585_v54 }
 0x22f   :  { %1507 = vpow2.f32 %v610_v17  ;;  %v602_v41 = vmul.f32 1.442695, %v578_v34  ;;  %v604_v47 = vmul.f32 1.442695, %v579_v39 }
 0x230   :  { %1509 = vpow2.f32 %v596_v22  ;;  %v612_v56 = vmul.f32 1.442695, %v583_v46 }
 0x231   :  { %1511 = vpow2.f32 %v614_v23 }
 0x232   :  { %1513 = vpow2.f32 %v598_v12 }
 0x233   :  { %v1800_v16 = vpop.eup %1495  ;;  %1515 = vpow2.f32 %v600_v35 }
 0x234   :  { %v1803_v19 = vpop.eup %1497  ;;  %635 = vperm.xlu1 %1484, %v1800_v16   ;;  %1517 = vpow2.f32 %v602_v41 }
 0x235   :  { %638 = vperm.xlu0 %1485, %v1803_v19   ;;  %v1809_v29 = vpop.eup %1499  ;;  %1519 = vpow2.f32 %v604_v47 }
 0x236   :  { %v1815_v32 = vpop.eup %1501  ;;  %1521 = vpow2.f32 %v608_v50 }
 0x237   :  { %v1818_v37 = vpop.eup %1503  ;;  %1523 = vpow2.f32 %v612_v56 }
 0x238   :  { %641 = vperm.xlu1 %1484, %v1809_v29   ;;  %v1822_v36 = vpop.eup %1505  ;;  %1525 = vpow2.f32 %v616_v57 }
 0x239   :  { %665 = vperm.xlu0 %1485, %v1818_v37   ;;  %v1825_v38 = vpop.eup %1507 }
 0x23a   :  { %v1829_v42 = vpop.eup %1509 }
 0x23b   :  { %v1832_v44 = vpop.eup %1511 }
 0x23c   :  { %644 = vperm.xlu1 %1484, %v1815_v32   ;;  %v1837_v48 = vpop.eup %1513 }
 0x23d   :  { %671 = vperm.xlu0 %1485, %v1825_v38   ;;  %v1842_v53 = vpop.eup %1515 }
 0x23e   :  { %v1846_v52 = vpop.eup %1517 }
 0x23f   :  { %v1849_v59 = vpop.eup %1519 }
 0x240   :  { %647 = vperm.xlu1 %1484, %v1822_v36   ;;  %v1852_v61 = vpop.eup %1521 }
 0x241   :  { %677 = vperm.xlu0 %1485, %v1832_v44   ;;  %v1855_v33 = vpop.eup %1523 }
 0x242   :  { %v1858_v18 = vpop.eup %1525 }
 0x244   :  { %650 = vperm.xlu1 %1484, %v1829_v42  }
 0x248   :  { %653 = vperm.xlu1 %1484, %v1837_v48  }
 0x24c   :  { %656 = vperm.xlu1 %1484, %v1842_v53  }
 0x250   :  { %659 = vperm.xlu1 %1484, %v1846_v52  }
 0x254   :  { %662 = vperm.xlu1 %1484, %v1849_v59  }
 0x258   :  { %668 = vperm.xlu1 %1484, %v1852_v61  }
 0x25c   :  { %674 = vperm.xlu1 %1484, %v1855_v33  }
 0x260   :  { %680 = vperm.xlu1 %1484, %v1858_v18  }
 0x2b3   :  { %v636_v31 = vpop.permute.xlu1 %635 }
 0x2b4   :  { %v639_v10 = vpop.permute.xlu0 %638  ;;  %v685_v24 = vrot.slane %v636_v31, %v1693_v30 }
 0x2b5   :  { %v689_v13 = vrot.slane %v639_v10, %v1682_v25 }
 0x2b7   :  { %v642_v60 = vpop.permute.xlu1 %641  ;;  %v690_v56 = vsel %vm445_vm3, %v689_v13, %v685_v24 }
 0x2b8   :  { %v666_v55 = vpop.permute.xlu0 %665  ;;  %v694_v12 = vrot.slane %v642_v60, %v1693_v30 }
 0x2b9   :  { %v730_v57 = vrot.slane %v666_v55, %v1693_v30 }
 0x2bb   :  { %v645_v63 = vpop.permute.xlu1 %644 }
 0x2bc   :  { %v698_v17 = vrot.slane %v645_v63, %v1682_v25  ;;  %v672_v21 = vpop.permute.xlu0 %671 }
 0x2bd   :  { %v739_v63 = vrot.slane %v672_v21, %v1693_v30 }
 0x2be   :  { %v699_v41 = vsel %vm445_vm3, %v698_v17, %v694_v12 }
 0x2bf   :  { %v648_v0 = vpop.permute.xlu1 %647 }
 0x2c0   :  { %v703_v35 = vrot.slane %v648_v0, %v1693_v30  ;;  %v754_v0 = vsel %vm510_vm4, %v699_v41, %v690_v56 }
 0x2c3   :  { %v651_v26 = vpop.permute.xlu1 %650 }
 0x2c4   :  { %v707_v22 = vrot.slane %v651_v26, %v1682_v25  ;;  %v678_v26 = vpop.permute.xlu0 %677 }
 0x2c5   :  { %v748_v17 = vrot.slane %v678_v26, %v1693_v30 }
 0x2c6   :  { %v708_v46 = vsel %vm445_vm3, %v707_v22, %v703_v35 }
 0x2c7   :  { %v654_v1 = vpop.permute.xlu1 %653  ;;  %v755_v10 = vsel %vm512_vm5, %v708_v46, %v754_v0 }
 0x2c8   :  { %v712_v43 = vrot.slane %v654_v1, %v1693_v30 }
 0x2cb   :  { %v657_v11 = vpop.permute.xlu1 %656 }
 0x2cc   :  { %v716_v34 = vrot.slane %v657_v11, %v1682_v25 }
 0x2ce   :  { %v717_v31 = vsel %vm445_vm3, %v716_v34, %v712_v43 }
 0x2cf   :  { %v660_v15 = vpop.permute.xlu1 %659 }
 0x2d0   :  { %v721_v50 = vrot.slane %v660_v15, %v1693_v30  ;;  %v756_v15 = vsel %vm514_vm6, %v717_v31, %v755_v10 }
 0x2d3   :  { %v663_v28 = vpop.permute.xlu1 %662 }
 0x2d4   :  { %v725_v39 = vrot.slane %v663_v28, %v1682_v25 }
 0x2d6   :  { %v726_v1 = vsel %vm445_vm3, %v725_v39, %v721_v50 }
 0x2d7   :  { %v669_v23 = vpop.permute.xlu1 %668  ;;  %v757_v22 = vsel %vm516_vm7, %v726_v1, %v756_v15  ;;  %v1531_v1 = vmov 0.0  }
 0x2d8   :  { %v734_v47 = vrot.slane %v669_v23, %v1682_v25  ;;  %1431 = vmatprep.subr.bf16.mxu1 %v1531_v1  ;;  %1433 = vmatprep.mubr.msk.bf16.mxu1 %vm1532_vm12, %v1531_v1 }
 0x2d9   :  { %1432 = vmatpush3.bf16.msra.mxu1 %v1569_v2  ;;  %1455 = vmatprep.subr.bf16.mxu0 %v1531_v1 }
 0x2da   :  { %v735_v11 = vsel %vm445_vm3, %v734_v47, %v730_v57  ;;  %1437 = vmatprep.subr.bf16.mxu1 %v1531_v1  ;;  %1456 = vmatpush3.bf16.msra.mxu0 %v1595_v6 }
 0x2db   :  { %v675_v54 = vpop.permute.xlu1 %674  ;;  %v758_v23 = vsel %vm518_vm8, %v735_v11, %v757_v22  ;;  %1457 = vmatprep.mubr.msk.bf16.mxu0 %vm1532_vm12, %v1531_v1  ;;  %1467 = vmatprep.subr.bf16.mxu0 %v1531_v1 }
 0x2dc   :  { %v743_v60 = vrot.slane %v675_v54, %v1682_v25 }
 0x2de   :  { %v744_v28 = vsel %vm445_vm3, %v743_v60, %v739_v63 }
 0x2df   :  { %v681_v55 = vpop.permute.xlu1 %680  ;;  %v759_v24 = vsel %vm520_vm9, %v744_v28, %v758_v23 }
 0x2e0   :  { %v752_v21 = vrot.slane %v681_v55, %v1682_v25 }
 0x2e2   :  { %v753_v13 = vsel %vm445_vm3, %v752_v21, %v748_v17 }
 0x2e3   :  { %v760_v12 = vsel %vm522_vm10, %v753_v13, %v759_v24 }
 0x2e4   :  { %v762_v34 = vsel %vm525_vm11, %v760_v12, 0.0 }
 0x2e5   :  { %763 = vadd.xlane.f32.xlu0 %v762_v34 }
 0x372   :  { %v764_v35 = vpop.xlane.xlu0 %763 }
 0x373   :  { %1527 = vrcp.f32 %v764_v35 }
 0x37d   :  { %v1528_v39 = vpop.eup %1527 }
 0x37e   :  { %v786_v41 = vrot.slane %v1528_v39, %v548_v58  ;;  %v770_v43 = vrot.slane %v1528_v39, %v1630_v20  ;;  %v798_v47 = vrot.slane %v1528_v39, %v560_v27  ;;  %v774_v46 = vrot.slane %v1528_v39, %v536_v40 }
 0x37f   :  { %v790_v28 = vrot.slane %v1528_v39, %v552_v45 }
 0x380   :  { %v815_v50 = vmul.f32 %v1846_v52, %v786_v41  ;;  %v816_v54 = vmul.f32 %v1849_v59, %v786_v41  ;;  %v807_v56 = vmul.f32 %v1800_v16, %v770_v43  ;;  %v808_v57 = vmul.f32 %v1803_v19, %v770_v43 }
 0x381   :  { %v821_v31 = vmul.f32 %v1832_v44, %v798_v47  ;;  %v822_v58 = vmul.f32 %v1858_v18, %v798_v47  ;;  %v809_v63 = vmul.f32 %v1809_v29, %v774_v46  ;;  %v810_v40 = vmul.f32 %v1815_v32, %v774_v46 }
 0x382   :  { %v827_v60 = vpack.c.bf16 %v816_v54, %v815_v50  ;;  %v823_v20 = vpack.c.bf16 %v808_v57, %v807_v56  ;;  %v778_v19 = vrot.slane %v1528_v39, %v540_v49  ;;  %v782_v49 = vrot.slane %v1528_v39, %v544_v62 }
 0x383   :  { %v830_v26 = vpack.c.bf16 %v822_v58, %v821_v31  ;;  %v824_v16 = vpack.c.bf16 %v810_v40, %v809_v63  ;;  %v817_v55 = vmul.f32 %v1818_v37, %v790_v28  ;;  %v818_v17 = vmul.f32 %v1852_v61, %v790_v28 }
 0x384   :  { %v1084_v27 = vunpack.c.l.b16 %v827_v60  ;;  %v832_v0 = vunpack.c.l.b16 %v823_v20  ;;  %v833_v59 = vunpack.c.h.b16 %v823_v20  ;;  %v811_v18 = vmul.f32 %v1822_v36, %v778_v19 }
 0x385   :  { %v1273_v52 = vunpack.c.l.b16 %v830_v26  ;;  %v895_v44 = vunpack.c.l.b16 %v824_v16  ;;  %v812_v29 = vmul.f32 %v1829_v42, %v778_v19  ;;  %v896_v32 = vunpack.c.h.b16 %v824_v16 }
 0x386   :  { %1087 = vperm.xlu0 %1485, %v1084_v27   ;;  %835 = vperm.xlu1 %1484, %v832_v0   ;;  %v813_v36 = vmul.f32 %v1837_v48, %v782_v49  ;;  %v814_v42 = vmul.f32 %v1842_v53, %v782_v49  ;;  %v1085_v22 = vunpack.c.h.b16 %v827_v60  ;;  %v828_v21 = vpack.c.bf16 %v818_v17, %v817_v55 }
 0x387   :  { %v825_v10 = vpack.c.bf16 %v812_v29, %v811_v18  ;;  %v794_v48 = vrot.slane %v1528_v39, %v556_v51  ;;  %v1274_v61 = vunpack.c.h.b16 %v830_v26 }
 0x388   :  { %v826_v62 = vpack.c.bf16 %v814_v42, %v813_v36  ;;  %v1147_v53 = vunpack.c.l.b16 %v828_v21  ;;  %v1148_v45 = vunpack.c.h.b16 %v828_v21 }
 0x389   :  { %v958_v2 = vunpack.c.l.b16 %v825_v10  ;;  %v959_v11 = vunpack.c.h.b16 %v825_v10  ;;  %v819_v23 = vmul.f32 %v1825_v38, %v794_v48  ;;  %v820_v13 = vmul.f32 %v1855_v33, %v794_v48 }
 0x38a   :  { %1276 = vperm.xlu0 %1485, %v1273_v52   ;;  %838 = vperm.xlu1 %1484, %v833_v59   ;;  %v1021_v15 = vunpack.c.l.b16 %v826_v62  ;;  %v1022_v6 = vunpack.c.h.b16 %v826_v62 }
 0x38b   :  { %v829_v24 = vpack.c.bf16 %v820_v13, %v819_v23 }
 0x38d   :  { %v1210_v12 = vunpack.c.l.b16 %v829_v24  ;;  %v1211_v37 = vunpack.c.h.b16 %v829_v24 }
 0x38e   :  { %898 = vperm.xlu1 %1484, %v895_v44  }
 0x392   :  { %901 = vperm.xlu1 %1484, %v896_v32  }
 0x396   :  { %961 = vperm.xlu1 %1484, %v958_v2  }
 0x39a   :  { %964 = vperm.xlu1 %1484, %v959_v11  }
 0x39e   :  { %1024 = vperm.xlu1 %1484, %v1021_v15  }
 0x3a2   :  { %1027 = vperm.xlu1 %1484, %v1022_v6  }
 0x3a6   :  { %1090 = vperm.xlu1 %1484, %v1085_v22  }
 0x3aa   :  { %1150 = vperm.xlu1 %1484, %v1147_v53  }
 0x3ae   :  { %1153 = vperm.xlu1 %1484, %v1148_v45  }
 0x3b2   :  { %1213 = vperm.xlu1 %1484, %v1210_v12  }
 0x3b6   :  { %1216 = vperm.xlu1 %1484, %v1211_v37  }
 0x3ba   :  { %1279 = vperm.xlu1 %1484, %v1274_v61  }
 0x405   :  { %v836_v34 = vpop.permute.xlu1 %835  ;;  %v1088_v27 = vpop.permute.xlu0 %1087 }
 0x406   :  { %v843_v14 = vrot.slane %v836_v34, %v1693_v30  ;;  %v1095_v52 = vrot.slane %v1088_v27, %v1693_v30 }
 0x409   :  { %v839_v35 = vpop.permute.xlu1 %838  ;;  %v1277_v36 = vpop.permute.xlu0 %1276 }
 0x40a   :  { %v847_v51 = vrot.slane %v839_v35, %v1682_v25  ;;  %v1284_v15 = vrot.slane %v1277_v36, %v1693_v30 }
 0x40c   :  { %v848_v38 = vsel %vm445_vm3, %v847_v51, %v843_v14 }
 0x40d   :  { %v849_v39 = vpack.c.b16 %v848_v38, %v848_v38  ;;  %v899_v33 = vpop.permute.xlu1 %898 }
 0x40e   :  { %v906_v43 = vrot.slane %v899_v33, %v1693_v30 }
 0x40f   :  { %1434 = vmatmul.mubr.msk.bf16.vlgmr.msra.gmra.mrb[0].mxu1 %vm525_vm11, %v849_v39 }
 0x410   :  { %1438 = vmatpush3.bf16.msra.mxu1 %v1574_v3  ;;  %1439 = vmatprep.mubr.msk.bf16.mxu1 %vm1532_vm12, %v1531_v1 }
 0x411   :  { %v902_v41 = vpop.permute.xlu1 %901  ;;  %1443 = vmatprep.subr.bf16.mxu1 %v1531_v1 }
 0x412   :  { %v910_v47 = vrot.slane %v902_v41, %v1682_v25 }
 0x414   :  { %v911_v46 = vsel %vm445_vm3, %v910_v47, %v906_v43 }
 0x415   :  { %v912_v50 = vpack.c.b16 %v911_v46, %v911_v46  ;;  %v962_v54 = vpop.permute.xlu1 %961 }
 0x416   :  { %v969_v56 = vrot.slane %v962_v54, %v1693_v30 }
 0x417   :  { %1440 = vmatmul.mubr.msk.bf16.vlgmr.msra.gmra.mrb[4].mxu1 %vm525_vm11, %v912_v50 }
 0x418   :  { %1444 = vmatpush3.bf16.msra.mxu1 %v1581_v4  ;;  %1445 = vmatprep.mubr.msk.bf16.mxu1 %vm1532_vm12, %v1531_v1 }
 0x419   :  { %v965_v3 = vpop.permute.xlu1 %964  ;;  %1449 = vmatprep.subr.bf16.mxu1 %v1531_v1 }
 0x41a   :  { %v973_v57 = vrot.slane %v965_v3, %v1682_v25 }
 0x41c   :  { %v974_v31 = vsel %vm445_vm3, %v973_v57, %v969_v56 }
 0x41d   :  { %v975_v58 = vpack.c.b16 %v974_v31, %v974_v31  ;;  %v1025_v60 = vpop.permute.xlu1 %1024 }
 0x41e   :  { %v1032_v20 = vrot.slane %v1025_v60, %v1693_v30 }
 0x41f   :  { %1446 = vmatmul.mubr.msk.bf16.vlgmr.msra.gmra.mrb[8].mxu1 %vm525_vm11, %v975_v58 }
 0x420   :  { %1450 = vmatpush3.bf16.msra.mxu1 %v1590_v5  ;;  %1451 = vmatprep.mubr.msk.bf16.mxu1 %vm1532_vm12, %v1531_v1 }
 0x421   :  { %v1028_v4 = vpop.permute.xlu1 %1027  ;;  %1461 = vmatprep.subr.bf16.mxu1 %v1531_v1 }
 0x422   :  { %v1036_v63 = vrot.slane %v1028_v4, %v1682_v25 }
 0x424   :  { %v1037_v0 = vsel %vm445_vm3, %v1036_v63, %v1032_v20 }
 0x425   :  { %v1038_v26 = vpack.c.b16 %v1037_v0, %v1037_v0  ;;  %v1091_v40 = vpop.permute.xlu1 %1090 }
 0x426   :  { %v1099_v59 = vrot.slane %v1091_v40, %v1682_v25 }
 0x427   :  { %1452 = vmatmul.mubr.msk.bf16.vlgmr.msra.gmra.mrb[12].mxu1 %vm525_vm11, %v1038_v26 }
 0x428   :  { %v1100_v5 = vsel %vm445_vm3, %v1099_v59, %v1095_v52  ;;  %1462 = vmatpush3.bf16.msra.mxu1 %v1604_v7  ;;  %1463 = vmatprep.mubr.msk.bf16.mxu1 %vm1532_vm12, %v1531_v1 }
 0x429   :  { %v1101_v16 = vpack.c.b16 %v1100_v5, %v1100_v5  ;;  %v1151_v19 = vpop.permute.xlu1 %1150  ;;  %1473 = vmatprep.subr.bf16.mxu1 %v1531_v1 }
 0x42a   :  { %v1158_v18 = vrot.slane %v1151_v19, %v1693_v30 }
 0x42b   :  { %1458 = vmatmul.mubr.msk.bf16.vlgmr.msra.gmra.mrb[16].mxu0 %vm525_vm11, %v1101_v16 }
 0x42c   :  { %1468 = vmatpush3.bf16.msra.mxu0 %v1609_v8  ;;  %1469 = vmatprep.mubr.msk.bf16.mxu0 %vm1532_vm12, %v1531_v1 }
 0x42d   :  { %v1154_v44 = vpop.permute.xlu1 %1153 }
 0x42e   :  { %v1162_v29 = vrot.slane %v1154_v44, %v1682_v25 }
 0x430   :  { %v1163_v7 = vsel %vm445_vm3, %v1162_v29, %v1158_v18 }
 0x431   :  { %v1164_v32 = vpack.c.b16 %v1163_v7, %v1163_v7  ;;  %v1214_v10 = vpop.permute.xlu1 %1213 }
 0x432   :  { %v1221_v49 = vrot.slane %v1214_v10, %v1693_v30 }
 0x433   :  { %1464 = vmatmul.mubr.msk.bf16.vlgmr.msra.gmra.mrb[16].mxu1 %vm525_vm11, %v1164_v32 }
 0x434   :  { %1474 = vmatpush3.bf16.msra.mxu1 %v1618_v9  ;;  %1475 = vmatprep.mubr.msk.bf16.mxu1 %vm1532_vm12, %v1531_v1 }
 0x435   :  { %v1217_v8 = vpop.permute.xlu1 %1216 }
 0x436   :  { %v1225_v2 = vrot.slane %v1217_v8, %v1682_v25 }
 0x438   :  { %v1226_v42 = vsel %vm445_vm3, %v1225_v2, %v1221_v49 }
 0x439   :  { %v1227_v11 = vpack.c.b16 %v1226_v42, %v1226_v42  ;;  %v1280_v62 = vpop.permute.xlu1 %1279 }
 0x43a   :  { %v1288_v28 = vrot.slane %v1280_v62, %v1682_v25 }
 0x43b   :  { %1470 = vmatmul.mubr.msk.bf16.vlgmr.msra.gmra.mrb[20].mxu0 %vm525_vm11, %v1227_v11 }
 0x43c   :  { %v1289_v9 = vsel %vm445_vm3, %v1288_v28, %v1284_v15 }
 0x43d   :  { %v1290_v6 = vpack.c.b16 %v1289_v9, %v1289_v9 }
 0x43f   :  { %1476 = vmatmul.mubr.msk.bf16.vlgmr.msra.gmra.mrb[20].mxu1 %vm525_vm11, %v1290_v6 }
 0x4e2   :  { %v888_v1 = vpop.f32.mrb[0].mxu1 }
 0x4e3   :  { %v1435_v55 = vpop.f32.mrb[1].mxu1 }
 0x4e4   :  { %v891_v17 = vpop.f32.mrb[2].mxu1 }
 0x4e5   :  { %v1436_v22 = vpop.f32.mrb[3].mxu1 }
 0x4ea   :  { %v951_v21 = vpop.f32.mrb[4].mxu1 }
 0x4eb   :  { %v1343_v48 = vrot.slane %v951_v21, 7  ;;  %v1441_v53 = vpop.f32.mrb[5].mxu1 }
 0x4ec   :  { %v954_v23 = vpop.f32.mrb[6].mxu1 }
 0x4ed   :  { %v1344_v13 = vsel %vm510_vm4, %v1343_v48, %v888_v1  ;;  %v1442_v30 = vpop.f32.mrb[7].mxu1 }
 0x4f2   :  { %v1014_v45 = vpop.f32.mrb[8].mxu1 }
 0x4f3   :  { %v1345_v25 = vrot.slane %v1014_v45, 6  ;;  %v1447_v24 = vpop.f32.mrb[9].mxu1 }
 0x4f4   :  { %v1017_v12 = vpop.f32.mrb[10].mxu1 }
 0x4f5   :  { %v1346_v37 = vsel %vm512_vm5, %v1345_v25, %v1344_v13  ;;  %v1448_v61 = vpop.f32.mrb[11].mxu1 }
 0x4fa   :  { %v1077_v34 = vpop.f32.mrb[12].mxu1 }
 0x4fb   :  { %v1347_v35 = vrot.slane %v1077_v34, 5  ;;  %v1453_v14 = vpop.f32.mrb[13].mxu1 }
 0x4fc   :  { %v1080_v51 = vpop.f32.mrb[14].mxu1 }
 0x4fd   :  { %v1348_v38 = vsel %vm514_vm6, %v1347_v35, %v1346_v37  ;;  %v1454_v39 = vpop.f32.mrb[15].mxu1 }
 0x4fe   :  { %v1140_v33 = vpop.f32.mrb[16].mxu0 }
 0x4ff   :  { %v1349_v41 = vrot.slane %v1140_v33, 4  ;;  %v1459_v43 = vpop.f32.mrb[17].mxu0 }
 0x500   :  { %v1143_v47 = vpop.f32.mrb[18].mxu0 }
 0x501   :  { %v1350_v46 = vsel %vm516_vm7, %v1349_v41, %v1348_v38  ;;  %v1460_v50 = vpop.f32.mrb[19].mxu0 }
 0x506   :  { %v1203_v54 = vpop.f32.mrb[16].mxu1 }
 0x507   :  { %v1351_v3 = vrot.slane %v1203_v54, 3  ;;  %v1465_v56 = vpop.f32.mrb[17].mxu1 }
 0x508   :  { %v1206_v57 = vpop.f32.mrb[18].mxu1 }
 0x509   :  { %v1352_v31 = vsel %vm518_vm8, %v1351_v3, %v1350_v46  ;;  %v1466_v58 = vpop.f32.mrb[19].mxu1 }
 0x50e   :  { %v1266_v60 = vpop.f32.mrb[20].mxu0 }
 0x50f   :  { %v1353_v4 = vrot.slane %v1266_v60, 2  ;;  %v1471_v20 = vpop.f32.mrb[21].mxu0 }
 0x510   :  { %v1269_v63 = vpop.f32.mrb[22].mxu0 }
 0x511   :  { %v1354_v27 = vsel %vm520_vm9, %v1353_v4, %v1352_v31  ;;  %v1472_v0 = vpop.f32.mrb[23].mxu0 }
 0x512   :  { %v1329_v26 = vpop.f32.mrb[20].mxu1 }
 0x513   :  { %v1355_v40 = vrot.slane %v1329_v26, 1  ;;  %v1477_v52 = vpop.f32.mrb[21].mxu1 }
 0x514   :  { %v1332_v59 = vpop.f32.mrb[22].mxu1 }
 0x515   :  { %v1356_v5 = vsel %vm522_vm10, %v1355_v40, %v1354_v27  ;;  %v1478_v16 = vpop.f32.mrb[23].mxu1 }
 0x516   :  { %1358 = vst.msk [vmem:[%s2004_s5] sm:$0xff] %vm79_vm1, %v1356_v5 }

</bundles_post_ra>
